<compile_context>
chip_gen: v6e
topology: v6e:2x2x1
jax: 0.10.0
libtpu: 0.0.40
codegen_flags: <defaults>
</compile_context>

<pallas_src>
import jax
import jax.numpy as jnp
from jax import lax
from jax.experimental import pallas as pl
from jax.experimental.pallas import tpu as pltpu

DIM = 32
HEADS = 4
HEAD_DIM = DIM // HEADS
SEQ = 8
BATCH = 2
EPS_LN = 1e-5
EPS_BN = 1e-5

# Row indices inside the packed (16, DIM) per-channel-vector block.
_ROW_PRE_G, _ROW_PRE_B = 0, 1
_ROW_BQ, _ROW_BK, _ROW_BV = 2, 3, 4
_ROW_BO = 5
_ROW_BN_SCALE, _ROW_BN_SHIFT = 6, 7
_ROW_NORM_G, _ROW_NORM_B = 8, 9
_VEC_ROWS = 16  # padded to a whole number of (8-row) sublane tiles


def _layernorm(x, gamma, beta):
    mean = jnp.mean(x, axis=-1, keepdims=True)
    var = jnp.mean((x - mean) ** 2, axis=-1, keepdims=True)
    return (x - mean) / jnp.sqrt(var + EPS_LN) * gamma + beta


def cross_view_attention_kernel(q_ref, kv_ref, w_ref, vec_ref, bias_ref, out_ref):
    # Token rows are b-major: row r = b * SEQ + s  (same-batch tokens contiguous).
    q = q_ref[...]       # (SB, D)
    kv = kv_ref[...]     # (2*SB, D) = [k ; v]
    w = w_ref[...]       # (D, 4*D)  = [Wq^T*scale | Wk^T | Wv^T | Wo^T]
    vec = vec_ref[...]   # (16, D)   packed per-channel vectors
    bias = bias_ref[...]  # (SB, SB) block-diagonal additive mask (0 / -1e30), f32

    pre_g = vec[_ROW_PRE_G:_ROW_PRE_G + 1, :]
    pre_b = vec[_ROW_PRE_B:_ROW_PRE_B + 1, :]
    bq = vec[_ROW_BQ:_ROW_BQ + 1, :]
    bk = vec[_ROW_BK:_ROW_BK + 1, :]
    bv = vec[_ROW_BV:_ROW_BV + 1, :]
    bo = vec[_ROW_BO:_ROW_BO + 1, :]
    bn_sc = vec[_ROW_BN_SCALE:_ROW_BN_SCALE + 1, :]
    bn_sh = vec[_ROW_BN_SHIFT:_ROW_BN_SHIFT + 1, :]
    norm_g = vec[_ROW_NORM_G:_ROW_NORM_G + 1, :]
    norm_b = vec[_ROW_NORM_B:_ROW_NORM_B + 1, :]

    SB = q.shape[0]
    D = q.shape[1]

    # ---- pre-LayerNorm on q (the residual also uses this value, matching the
    #      PyTorch module where `q` is reassigned to pre_norm(q)) ----
    qn = _layernorm(q, pre_g, pre_b)

    # ---- fused in-projections: ONE (3*SB, D) @ (D, 3*D) matmul.
    #      Softmax scale is pre-folded into Wq/bq on the host. ----
    x = jnp.concatenate([qn, kv], axis=0)                                   # (48, D)
    proj = jnp.dot(x, w[:, :3 * D], preferred_element_type=jnp.float32)     # (48, 3D)
    Q = proj[0:SB, 0:D] + bq
    K = proj[SB:2 * SB, D:2 * D] + bk
    V = proj[2 * SB:3 * SB, 2 * D:3 * D] + bv

    # ---- per-head attention (HEADS=4, static unroll); out-projection hoisted
    #      out of the loop: head outputs are lane-concatenated once and fed
    #      through a single (SB, D) @ (D, D) matmul. ----
    heads = []
    for h in range(HEADS):
        sl = slice(h * HEAD_DIM, (h + 1) * HEAD_DIM)
        s = lax.dot_general(
            Q[:, sl], K[:, sl], (((1,), (1,)), ((), ())),
            preferred_element_type=jnp.float32,
        ) + bias
        s = s - jnp.max(s, axis=-1, keepdims=True)
        p = jnp.exp(s)
        p = p / jnp.sum(p, axis=-1, keepdims=True)   # exact softmax (no approx recip)
        heads.append(jnp.dot(p, V[:, sl], preferred_element_type=jnp.float32))
    att = jnp.concatenate(heads, axis=-1)                                   # (SB, D)
    att = jnp.dot(att, w[:, 3 * D:4 * D], preferred_element_type=jnp.float32) + bo

    # ---- BatchNorm1d (eval) = per-channel affine (running stats folded);
    #      Dropout is identity (eval); residual uses the pre-normed q. ----
    att = att * bn_sc + bn_sh
    out_ref[...] = _layernorm(qn + att, norm_g, norm_b).astype(out_ref.dtype)


def prepare_kernel_params(params):
    """One-time host work: pack weights into a lane-dense slab, pack the
    per-channel vectors into one block, fold the softmax scale into Wq/bq,
    and precompute the block-diagonal cross-batch attention mask."""
    D = DIM
    w_in, b_in = params["w_in"], params["b_in"][0]            # (3D, D), (3D,)
    scale = 1.0 / (HEAD_DIM ** 0.5)
    wq_t = (w_in[:D] * scale).T
    wk_t = w_in[D:2 * D].T
    wv_t = w_in[2 * D:].T
    wo_t = params["w_out"].T
    w_slab = jnp.concatenate([wq_t, wk_t, wv_t, wo_t], axis=1)  # (32, 128), lane-dense

    vec = jnp.zeros((_VEC_ROWS, D), jnp.float32)
    rows = {
        _ROW_PRE_G: params["pre_gamma"][0],
        _ROW_PRE_B: params["pre_beta"][0],
        _ROW_BQ: b_in[:D] * scale,
        _ROW_BK: b_in[D:2 * D],
        _ROW_BV: b_in[2 * D:],
        _ROW_BO: params["b_out"][0],
        _ROW_BN_SCALE: params["bn_scale"][0],
        _ROW_BN_SHIFT: params["bn_shift"][0],
        _ROW_NORM_G: params["norm_gamma"][0],
        _ROW_NORM_B: params["norm_beta"][0],
    }
    for r, val in rows.items():
        vec = vec.at[r].set(val)

    SB = SEQ * BATCH
    tok_batch = jnp.arange(SB) // SEQ            # b-major rows: r = b*SEQ + s
    same_batch = tok_batch[:, None] == tok_batch[None, :]
    attn_bias = jnp.where(same_batch, 0.0, -1e30).astype(jnp.float32)

    return dict(w_slab=w_slab, vec=vec, attn_bias=attn_bias)


def cross_view_attention(q, k, v, kernel_params):
    # q, k, v: (S, B, D) — PyTorch MultiheadAttention default layout.
    S, B, D = q.shape
    SB = S * B
    # b-major flattening (cheap ~2 KB host transposes) so same-batch tokens are
    # contiguous inside the kernel; k and v are stacked into a single input ref.
    qf = q.transpose(1, 0, 2).reshape(SB, D)
    kf = k.transpose(1, 0, 2).reshape(SB, D)
    vf = v.transpose(1, 0, 2).reshape(SB, D)
    kvf = jnp.concatenate([kf, vf], axis=0)       # (2*SB, D)

    vmem = pltpu.MemorySpace.VMEM
    out = pl.pallas_call(
        cross_view_attention_kernel,
        out_shape=jax.ShapeDtypeStruct((SB, D), q.dtype),
        in_specs=[pl.BlockSpec(memory_space=vmem)] * 5,
        out_specs=pl.BlockSpec(memory_space=vmem),
    )(qf, kvf, kernel_params["w_slab"], kernel_params["vec"],
      kernel_params["attn_bias"])
    # TODO(synk): to amortize launch overhead across many CrossViewAttention
    # instances, add a leading instance grid axis with dimension_semantics=("parallel",).
    return out.reshape(B, S, D).transpose(1, 0, 2)


def init_params(keys):
    D = DIM
    pre_gamma = 1.0 + 0.1 * jax.random.normal(keys[3], (1, D), jnp.float32)
    pre_beta = 0.1 * jax.random.normal(keys[4], (1, D), jnp.float32)
    w_in = jax.random.normal(keys[5], (3 * D, D), jnp.float32) / jnp.sqrt(D).astype(jnp.float32)
    b_in = 0.1 * jax.random.normal(keys[6], (1, 3 * D), jnp.float32)
    w_out = jax.random.normal(keys[7], (D, D), jnp.float32) / jnp.sqrt(D).astype(jnp.float32)
    b_out = 0.1 * jax.random.normal(keys[8], (1, D), jnp.float32)
    bn_gamma = 1.0 + 0.1 * jax.random.normal(keys[9], (1, D), jnp.float32)
    bn_beta = 0.1 * jax.random.normal(keys[10], (1, D), jnp.float32)
    bn_mean = 0.05 * jax.random.normal(keys[11], (1, D), jnp.float32)
    bn_var = 1.0 + 0.1 * jnp.abs(jax.random.normal(keys[12], (1, D), jnp.float32))
    bn_scale = bn_gamma / jnp.sqrt(bn_var + EPS_BN)
    bn_shift = bn_beta - bn_mean * bn_scale
    norm_gamma = 1.0 + 0.1 * jax.random.normal(keys[13], (1, D), jnp.float32)
    norm_beta = 0.1 * jax.random.normal(keys[14], (1, D), jnp.float32)
    return dict(
        pre_gamma=pre_gamma, pre_beta=pre_beta,
        w_in=w_in, b_in=b_in, w_out=w_out, b_out=b_out,
        bn_scale=bn_scale, bn_shift=bn_shift,
        norm_gamma=norm_gamma, norm_beta=norm_beta,
    )


def reference(q, k, v, params):
    """Pure-JAX replica of the PyTorch forward (eval mode) for validation."""
    def ln(x, g, b):
        m = jnp.mean(x, -1, keepdims=True)
        var = jnp.mean((x - m) ** 2, -1, keepdims=True)
        return (x - m) / jnp.sqrt(var + EPS_LN) * g + b

    S, B, D = q.shape
    qn = ln(q, params["pre_gamma"][0], params["pre_beta"][0])
    w_in, b_in = params["w_in"], params["b_in"][0]
    wq, wk, wv = w_in[:D], w_in[D:2 * D], w_in[2 * D:]
    bq, bk, bv = b_in[:D], b_in[D:2 * D], b_in[2 * D:]
    Q = qn @ wq.T + bq
    K = k @ wk.T + bk
    V = v @ wv.T + bv

    def split(x):
        return jnp.transpose(x.reshape(S, B * HEADS, HEAD_DIM), (1, 0, 2))

    Qh, Kh, Vh = split(Q), split(K), split(V)
    scale = 1.0 / (HEAD_DIM ** 0.5)
    scores = jnp.einsum('bqd,bkd->bqk', Qh * scale, Kh)
    p = jax.nn.softmax(scores, axis=-1)
    o = jnp.einsum('bqk,bkd->bqd', p, Vh)
    o = jnp.transpose(o, (1, 0, 2)).reshape(S, B, D)
    att = o @ params["w_out"].T + params["b_out"][0]
    att_bn = att * params["bn_scale"][0] + params["bn_shift"][0]
    return ln(qn + att_bn, params["norm_gamma"][0], params["norm_beta"][0])


if __name__ == "__main__":
    key = jax.random.PRNGKey(0)
    keys = jax.random.split(key, 16)
    q = jax.random.normal(keys[0], (SEQ, BATCH, DIM), jnp.float32)
    k = jax.random.normal(keys[1], (SEQ, BATCH, DIM), jnp.float32)
    v = jax.random.normal(keys[2], (SEQ, BATCH, DIM), jnp.float32)

    params = init_params(keys)
    kernel_params = prepare_kernel_params(params)

    out = cross_view_attention(q, k, v, kernel_params)
    out = jax.block_until_ready(out)

    ref = reference(q, k, v, params)
    max_err = float(jnp.max(jnp.abs(out - ref)))
    assert out.shape == (SEQ, BATCH, DIM)
    # exact softmax division -> tight tolerance restored
    assert jnp.allclose(out, ref, atol=5e-4, rtol=5e-4), max_err
    print("KERNEL_OK")
</pallas_src>

<mosaic_0001>
module attributes {stable_mosaic.version = 11 : i64} {
  func.func @cross_view_attention_kernel(%arg0: memref<16x32xf32, #tpu.memory_space<vmem>>, %arg1: memref<32x32xf32, #tpu.memory_space<vmem>>, %arg2: memref<32x128xf32, #tpu.memory_space<vmem>>, %arg3: memref<16x32xf32, #tpu.memory_space<vmem>>, %arg4: memref<16x16xf32, #tpu.memory_space<vmem>>, %arg5: memref<16x32xf32, #tpu.memory_space<vmem>>) attributes {dimension_semantics = [], scalar_prefetch = 0 : i64, scratch_operands = 0 : i64, tpu.core_type = #tpu.core_type<tc>} {
    %c0 = arith.constant 0 : index
    %c0_0 = arith.constant 0 : index
    %0 = vector.load %arg0[%c0, %c0_0] : memref<16x32xf32, #tpu.memory_space<vmem>>, vector<16x32xf32>
    %c0_1 = arith.constant 0 : index
    %c0_2 = arith.constant 0 : index
    %1 = vector.load %arg1[%c0_1, %c0_2] : memref<32x32xf32, #tpu.memory_space<vmem>>, vector<32x32xf32>
    %c0_3 = arith.constant 0 : index
    %c0_4 = arith.constant 0 : index
    %2 = vector.load %arg2[%c0_3, %c0_4] : memref<32x128xf32, #tpu.memory_space<vmem>>, vector<32x128xf32>
    %c0_5 = arith.constant 0 : index
    %c0_6 = arith.constant 0 : index
    %3 = vector.load %arg3[%c0_5, %c0_6] : memref<16x32xf32, #tpu.memory_space<vmem>>, vector<16x32xf32>
    %c0_7 = arith.constant 0 : index
    %c0_8 = arith.constant 0 : index
    %4 = vector.load %arg4[%c0_7, %c0_8] : memref<16x16xf32, #tpu.memory_space<vmem>>, vector<16x16xf32>
    %5 = vector.extract_strided_slice %3 {offsets = [0, 0], sizes = [1, 32], strides = [1, 1]} : vector<16x32xf32> to vector<1x32xf32>
    %6 = vector.extract_strided_slice %3 {offsets = [1, 0], sizes = [1, 32], strides = [1, 1]} : vector<16x32xf32> to vector<1x32xf32>
    %7 = vector.extract_strided_slice %3 {offsets = [2, 0], sizes = [1, 32], strides = [1, 1]} : vector<16x32xf32> to vector<1x32xf32>
    %8 = vector.extract_strided_slice %3 {offsets = [3, 0], sizes = [1, 32], strides = [1, 1]} : vector<16x32xf32> to vector<1x32xf32>
    %9 = vector.extract_strided_slice %3 {offsets = [4, 0], sizes = [1, 32], strides = [1, 1]} : vector<16x32xf32> to vector<1x32xf32>
    %10 = vector.extract_strided_slice %3 {offsets = [5, 0], sizes = [1, 32], strides = [1, 1]} : vector<16x32xf32> to vector<1x32xf32>
    %11 = vector.extract_strided_slice %3 {offsets = [6, 0], sizes = [1, 32], strides = [1, 1]} : vector<16x32xf32> to vector<1x32xf32>
    %12 = vector.extract_strided_slice %3 {offsets = [7, 0], sizes = [1, 32], strides = [1, 1]} : vector<16x32xf32> to vector<1x32xf32>
    %13 = vector.extract_strided_slice %3 {offsets = [8, 0], sizes = [1, 32], strides = [1, 1]} : vector<16x32xf32> to vector<1x32xf32>
    %14 = vector.extract_strided_slice %3 {offsets = [9, 0], sizes = [1, 32], strides = [1, 1]} : vector<16x32xf32> to vector<1x32xf32>
    %cst = arith.constant dense<0.000000e+00> : vector<16xf32>
    %15 = vector.multi_reduction <add>, %0, %cst [1] : vector<16x32xf32> to vector<16xf32>
    %16 = vector.shape_cast %15 : vector<16xf32> to vector<16x1xf32>
    %cst_9 = arith.constant 3.200000e+01 : f32
    %17 = vector.broadcast %cst_9 : f32 to vector<16x1xf32>
    %18 = arith.divf %16, %17 : vector<16x1xf32>
    %19 = vector.broadcast %18 : vector<16x1xf32> to vector<16x32xf32>
    %20 = arith.subf %0, %19 : vector<16x32xf32>
    %21 = arith.mulf %20, %20 : vector<16x32xf32>
    %cst_10 = arith.constant dense<0.000000e+00> : vector<16xf32>
    %22 = vector.multi_reduction <add>, %21, %cst_10 [1] : vector<16x32xf32> to vector<16xf32>
    %23 = vector.shape_cast %22 : vector<16xf32> to vector<16x1xf32>
    %cst_11 = arith.constant 3.200000e+01 : f32
    %24 = vector.broadcast %cst_11 : f32 to vector<16x1xf32>
    %25 = arith.divf %23, %24 : vector<16x1xf32>
    %26 = vector.broadcast %18 : vector<16x1xf32> to vector<16x32xf32>
    %27 = arith.subf %0, %26 : vector<16x32xf32>
    %cst_12 = arith.constant 9.99999974E-6 : f32
    %28 = vector.broadcast %cst_12 : f32 to vector<16x1xf32>
    %29 = arith.addf %25, %28 : vector<16x1xf32>
    %30 = math.sqrt %29 : vector<16x1xf32>
    %31 = vector.broadcast %30 : vector<16x1xf32> to vector<16x32xf32>
    %32 = arith.divf %27, %31 : vector<16x32xf32>
    %33 = vector.broadcast %5 : vector<1x32xf32> to vector<16x32xf32>
    %34 = arith.mulf %32, %33 : vector<16x32xf32>
    %35 = vector.broadcast %6 : vector<1x32xf32> to vector<16x32xf32>
    %36 = arith.addf %34, %35 : vector<16x32xf32>
    %37 = tpu.concatenate %36, %1 in 0 : vector<16x32xf32>, vector<32x32xf32> -> vector<48x32xf32>
    %38 = vector.extract_strided_slice %2 {offsets = [0, 0], sizes = [32, 96], strides = [1, 1]} : vector<32x128xf32> to vector<32x96xf32>
    %cst_13 = arith.constant dense<0.000000e+00> : vector<48x96xf32>
    %39 = tpu.matmul %37, %38, %cst_13 {dimension_numbers = #tpu.dot_dimension_numbers<[1], [0], [0], [1], [0, 0, 1, 1], [], []>} : vector<48x32xf32>, vector<32x96xf32>, vector<48x96xf32> -> vector<48x96xf32>
    %40 = vector.extract_strided_slice %39 {offsets = [0, 0], sizes = [16, 32], strides = [1, 1]} : vector<48x96xf32> to vector<16x32xf32>
    %41 = vector.broadcast %7 : vector<1x32xf32> to vector<16x32xf32>
    %42 = arith.addf %40, %41 : vector<16x32xf32>
    %43 = vector.extract_strided_slice %39 {offsets = [16, 32], sizes = [16, 32], strides = [1, 1]} : vector<48x96xf32> to vector<16x32xf32>
    %44 = vector.broadcast %8 : vector<1x32xf32> to vector<16x32xf32>
    %45 = arith.addf %43, %44 : vector<16x32xf32>
    %46 = vector.extract_strided_slice %39 {offsets = [32, 64], sizes = [16, 32], strides = [1, 1]} : vector<48x96xf32> to vector<16x32xf32>
    %47 = vector.broadcast %9 : vector<1x32xf32> to vector<16x32xf32>
    %48 = arith.addf %46, %47 : vector<16x32xf32>
    %49 = vector.extract_strided_slice %42 {offsets = [0, 0], sizes = [16, 8], strides = [1, 1]} : vector<16x32xf32> to vector<16x8xf32>
    %50 = vector.extract_strided_slice %45 {offsets = [0, 0], sizes = [16, 8], strides = [1, 1]} : vector<16x32xf32> to vector<16x8xf32>
    %cst_14 = arith.constant dense<0.000000e+00> : vector<16x16xf32>
    %51 = tpu.matmul %49, %50, %cst_14 {dimension_numbers = #tpu.dot_dimension_numbers<[1], [1], [0], [0], [0, 0, 1, 0], [], []>} : vector<16x8xf32>, vector<16x8xf32>, vector<16x16xf32> -> vector<16x16xf32>
    %52 = arith.addf %51, %4 : vector<16x16xf32>
    %cst_15 = arith.constant dense<0xFF800000> : vector<16xf32>
    %53 = vector.multi_reduction <maximumf>, %52, %cst_15 [1] : vector<16x16xf32> to vector<16xf32>
    %54 = vector.shape_cast %53 : vector<16xf32> to vector<16x1xf32>
    %55 = vector.broadcast %54 : vector<16x1xf32> to vector<16x16xf32>
    %56 = arith.subf %52, %55 : vector<16x16xf32>
    %57 = math.exp %56 : vector<16x16xf32>
    %cst_16 = arith.constant dense<0.000000e+00> : vector<16xf32>
    %58 = vector.multi_reduction <add>, %57, %cst_16 [1] : vector<16x16xf32> to vector<16xf32>
    %59 = vector.shape_cast %58 : vector<16xf32> to vector<16x1xf32>
    %60 = vector.broadcast %59 : vector<16x1xf32> to vector<16x16xf32>
    %61 = arith.divf %57, %60 : vector<16x16xf32>
    %62 = vector.extract_strided_slice %48 {offsets = [0, 0], sizes = [16, 8], strides = [1, 1]} : vector<16x32xf32> to vector<16x8xf32>
    %cst_17 = arith.constant dense<0.000000e+00> : vector<16x8xf32>
    %63 = tpu.matmul %61, %62, %cst_17 {dimension_numbers = #tpu.dot_dimension_numbers<[1], [0], [0], [1], [0, 0, 1, 1], [], []>} : vector<16x16xf32>, vector<16x8xf32>, vector<16x8xf32> -> vector<16x8xf32>
    %64 = vector.extract_strided_slice %42 {offsets = [0, 8], sizes = [16, 8], strides = [1, 1]} : vector<16x32xf32> to vector<16x8xf32>
    %65 = vector.extract_strided_slice %45 {offsets = [0, 8], sizes = [16, 8], strides = [1, 1]} : vector<16x32xf32> to vector<16x8xf32>
    %cst_18 = arith.constant dense<0.000000e+00> : vector<16x16xf32>
    %66 = tpu.matmul %64, %65, %cst_18 {dimension_numbers = #tpu.dot_dimension_numbers<[1], [1], [0], [0], [0, 0, 1, 0], [], []>} : vector<16x8xf32>, vector<16x8xf32>, vector<16x16xf32> -> vector<16x16xf32>
    %67 = arith.addf %66, %4 : vector<16x16xf32>
    %cst_19 = arith.constant dense<0xFF800000> : vector<16xf32>
    %68 = vector.multi_reduction <maximumf>, %67, %cst_19 [1] : vector<16x16xf32> to vector<16xf32>
    %69 = vector.shape_cast %68 : vector<16xf32> to vector<16x1xf32>
    %70 = vector.broadcast %69 : vector<16x1xf32> to vector<16x16xf32>
    %71 = arith.subf %67, %70 : vector<16x16xf32>
    %72 = math.exp %71 : vector<16x16xf32>
    %cst_20 = arith.constant dense<0.000000e+00> : vector<16xf32>
    %73 = vector.multi_reduction <add>, %72, %cst_20 [1] : vector<16x16xf32> to vector<16xf32>
    %74 = vector.shape_cast %73 : vector<16xf32> to vector<16x1xf32>
    %75 = vector.broadcast %74 : vector<16x1xf32> to vector<16x16xf32>
    %76 = arith.divf %72, %75 : vector<16x16xf32>
    %77 = vector.extract_strided_slice %48 {offsets = [0, 8], sizes = [16, 8], strides = [1, 1]} : vector<16x32xf32> to vector<16x8xf32>
    %cst_21 = arith.constant dense<0.000000e+00> : vector<16x8xf32>
    %78 = tpu.matmul %76, %77, %cst_21 {dimension_numbers = #tpu.dot_dimension_numbers<[1], [0], [0], [1], [0, 0, 1, 1], [], []>} : vector<16x16xf32>, vector<16x8xf32>, vector<16x8xf32> -> vector<16x8xf32>
    %79 = vector.extract_strided_slice %42 {offsets = [0, 16], sizes = [16, 8], strides = [1, 1]} : vector<16x32xf32> to vector<16x8xf32>
    %80 = vector.extract_strided_slice %45 {offsets = [0, 16], sizes = [16, 8], strides = [1, 1]} : vector<16x32xf32> to vector<16x8xf32>
    %cst_22 = arith.constant dense<0.000000e+00> : vector<16x16xf32>
    %81 = tpu.matmul %79, %80, %cst_22 {dimension_numbers = #tpu.dot_dimension_numbers<[1], [1], [0], [0], [0, 0, 1, 0], [], []>} : vector<16x8xf32>, vector<16x8xf32>, vector<16x16xf32> -> vector<16x16xf32>
    %82 = arith.addf %81, %4 : vector<16x16xf32>
    %cst_23 = arith.constant dense<0xFF800000> : vector<16xf32>
    %83 = vector.multi_reduction <maximumf>, %82, %cst_23 [1] : vector<16x16xf32> to vector<16xf32>
    %84 = vector.shape_cast %83 : vector<16xf32> to vector<16x1xf32>
    %85 = vector.broadcast %84 : vector<16x1xf32> to vector<16x16xf32>
    %86 = arith.subf %82, %85 : vector<16x16xf32>
    %87 = math.exp %86 : vector<16x16xf32>
    %cst_24 = arith.constant dense<0.000000e+00> : vector<16xf32>
    %88 = vector.multi_reduction <add>, %87, %cst_24 [1] : vector<16x16xf32> to vector<16xf32>
    %89 = vector.shape_cast %88 : vector<16xf32> to vector<16x1xf32>
    %90 = vector.broadcast %89 : vector<16x1xf32> to vector<16x16xf32>
    %91 = arith.divf %87, %90 : vector<16x16xf32>
    %92 = vector.extract_strided_slice %48 {offsets = [0, 16], sizes = [16, 8], strides = [1, 1]} : vector<16x32xf32> to vector<16x8xf32>
    %cst_25 = arith.constant dense<0.000000e+00> : vector<16x8xf32>
    %93 = tpu.matmul %91, %92, %cst_25 {dimension_numbers = #tpu.dot_dimension_numbers<[1], [0], [0], [1], [0, 0, 1, 1], [], []>} : vector<16x16xf32>, vector<16x8xf32>, vector<16x8xf32> -> vector<16x8xf32>
    %94 = vector.extract_strided_slice %42 {offsets = [0, 24], sizes = [16, 8], strides = [1, 1]} : vector<16x32xf32> to vector<16x8xf32>
    %95 = vector.extract_strided_slice %45 {offsets = [0, 24], sizes = [16, 8], strides = [1, 1]} : vector<16x32xf32> to vector<16x8xf32>
    %cst_26 = arith.constant dense<0.000000e+00> : vector<16x16xf32>
    %96 = tpu.matmul %94, %95, %cst_26 {dimension_numbers = #tpu.dot_dimension_numbers<[1], [1], [0], [0], [0, 0, 1, 0], [], []>} : vector<16x8xf32>, vector<16x8xf32>, vector<16x16xf32> -> vector<16x16xf32>
    %97 = arith.addf %96, %4 : vector<16x16xf32>
    %cst_27 = arith.constant dense<0xFF800000> : vector<16xf32>
    %98 = vector.multi_reduction <maximumf>, %97, %cst_27 [1] : vector<16x16xf32> to vector<16xf32>
    %99 = vector.shape_cast %98 : vector<16xf32> to vector<16x1xf32>
    %100 = vector.broadcast %99 : vector<16x1xf32> to vector<16x16xf32>
    %101 = arith.subf %97, %100 : vector<16x16xf32>
    %102 = math.exp %101 : vector<16x16xf32>
    %cst_28 = arith.constant dense<0.000000e+00> : vector<16xf32>
    %103 = vector.multi_reduction <add>, %102, %cst_28 [1] : vector<16x16xf32> to vector<16xf32>
    %104 = vector.shape_cast %103 : vector<16xf32> to vector<16x1xf32>
    %105 = vector.broadcast %104 : vector<16x1xf32> to vector<16x16xf32>
    %106 = arith.divf %102, %105 : vector<16x16xf32>
    %107 = vector.extract_strided_slice %48 {offsets = [0, 24], sizes = [16, 8], strides = [1, 1]} : vector<16x32xf32> to vector<16x8xf32>
    %cst_29 = arith.constant dense<0.000000e+00> : vector<16x8xf32>
    %108 = tpu.matmul %106, %107, %cst_29 {dimension_numbers = #tpu.dot_dimension_numbers<[1], [0], [0], [1], [0, 0, 1, 1], [], []>} : vector<16x16xf32>, vector<16x8xf32>, vector<16x8xf32> -> vector<16x8xf32>
    %109 = tpu.concatenate %63, %78, %93, %108 in 1 : vector<16x8xf32>, vector<16x8xf32>, vector<16x8xf32>, vector<16x8xf32> -> vector<16x32xf32>
    %110 = vector.extract_strided_slice %2 {offsets = [0, 96], sizes = [32, 32], strides = [1, 1]} : vector<32x128xf32> to vector<32x32xf32>
    %cst_30 = arith.constant dense<0.000000e+00> : vector<16x32xf32>
    %111 = tpu.matmul %109, %110, %cst_30 {dimension_numbers = #tpu.dot_dimension_numbers<[1], [0], [0], [1], [0, 0, 1, 1], [], []>} : vector<16x32xf32>, vector<32x32xf32>, vector<16x32xf32> -> vector<16x32xf32>
    %112 = vector.broadcast %10 : vector<1x32xf32> to vector<16x32xf32>
    %113 = arith.addf %111, %112 : vector<16x32xf32>
    %114 = vector.broadcast %11 : vector<1x32xf32> to vector<16x32xf32>
    %115 = arith.mulf %113, %114 : vector<16x32xf32>
    %116 = vector.broadcast %12 : vector<1x32xf32> to vector<16x32xf32>
    %117 = arith.addf %115, %116 : vector<16x32xf32>
    %118 = arith.addf %36, %117 : vector<16x32xf32>
    %cst_31 = arith.constant dense<0.000000e+00> : vector<16xf32>
    %119 = vector.multi_reduction <add>, %118, %cst_31 [1] : vector<16x32xf32> to vector<16xf32>
    %120 = vector.shape_cast %119 : vector<16xf32> to vector<16x1xf32>
    %cst_32 = arith.constant 3.200000e+01 : f32
    %121 = vector.broadcast %cst_32 : f32 to vector<16x1xf32>
    %122 = arith.divf %120, %121 : vector<16x1xf32>
    %123 = vector.broadcast %122 : vector<16x1xf32> to vector<16x32xf32>
    %124 = arith.subf %118, %123 : vector<16x32xf32>
    %125 = arith.mulf %124, %124 : vector<16x32xf32>
    %cst_33 = arith.constant dense<0.000000e+00> : vector<16xf32>
    %126 = vector.multi_reduction <add>, %125, %cst_33 [1] : vector<16x32xf32> to vector<16xf32>
    %127 = vector.shape_cast %126 : vector<16xf32> to vector<16x1xf32>
    %cst_34 = arith.constant 3.200000e+01 : f32
    %128 = vector.broadcast %cst_34 : f32 to vector<16x1xf32>
    %129 = arith.divf %127, %128 : vector<16x1xf32>
    %130 = vector.broadcast %122 : vector<16x1xf32> to vector<16x32xf32>
    %131 = arith.subf %118, %130 : vector<16x32xf32>
    %cst_35 = arith.constant 9.99999974E-6 : f32
    %132 = vector.broadcast %cst_35 : f32 to vector<16x1xf32>
    %133 = arith.addf %129, %132 : vector<16x1xf32>
    %134 = math.sqrt %133 : vector<16x1xf32>
    %135 = vector.broadcast %134 : vector<16x1xf32> to vector<16x32xf32>
    %136 = arith.divf %131, %135 : vector<16x32xf32>
    %137 = vector.broadcast %13 : vector<1x32xf32> to vector<16x32xf32>
    %138 = arith.mulf %136, %137 : vector<16x32xf32>
    %139 = vector.broadcast %14 : vector<1x32xf32> to vector<16x32xf32>
    %140 = arith.addf %138, %139 : vector<16x32xf32>
    %c0_36 = arith.constant 0 : index
    %c0_37 = arith.constant 0 : index
    %141 = vector.load %arg5[%c0_36, %c0_37] : memref<16x32xf32, #tpu.memory_space<vmem>>, vector<16x32xf32>
    tpu.vector_store %arg5[%c0_36, %c0_37], %140 {strides = array<i32>} : memref<16x32xf32, #tpu.memory_space<vmem>>, vector<16x32xf32>,
    return
  }
}

</mosaic_0001>

<bundles_post_ra>
// kernel: tpu_custom_call.1
= control target key start
LH: loop header
LB: loop body
LE: loop exit
PB: predicated region body
PF: predicated region fallthrough
CT: control target
= control target key end

     0   :  { %10 = vsyncpa [#allocation3], 0  ;;  %s1965_s0 = inlined_call_operand.hbm [shape: f32[16,32], index: 0, kind: input, shape index: {}]   ;;  %s1966_s1 = inlined_call_operand.hbm [shape: f32[32,32], index: 1, kind: input, shape index: {}]   ;;  %s1967_s2 = inlined_call_operand.hbm [shape: f32[32,128], index: 2, kind: input, shape index: {}]   ;;  %s1968_s3 = inlined_call_operand.hbm [shape: f32[16,32], index: 3, kind: input, shape index: {}]   ;;  %s1969_s4 = inlined_call_operand.hbm [shape: f32[16,16], index: 4, kind: input, shape index: {}]   ;;  %s1970_s5 = inlined_call_operand.hbm [shape: f32[16,32], index: 5, kind: output, shape index: {}]  }
   0x1   :  { %11 = vsyncpa [#allocation6], 0 }
   0x2   :  { %12 = vsyncpa [#allocation9], 0 }
   0x3   :  { %13 = vsyncpa [#allocation4], 0  ;;  %s1681_s18 = smov [#allocation5]   ;;  %s1682_s20 = smov [#allocation8]  }
   0x4   :  { %s31_s19 = sshll.u32 %s1681_s18, 4  ;;  %s55_s21 = sshll.u32 %s1682_s20, 4  ;;  %s32_s19 = int_to_ptr.vmem [resolvable:$true] %s31_s19  ;;  %s56_s21 = int_to_ptr.vmem [resolvable:$true] %s55_s21 }
   0x5   :  { %s1561_s22 = scalar_lea.vmem %s32_s19, 512  ;;  %p1566_p1 = scmp.lt.s32.totalorder %s32_s19, %s32_s19 }
   0x6   :  { %p1562_p0 = scmp.ne.s32.totalorder %s32_s19, %s1561_s22  ;;  %p1567_p2 = scmp.lt.s32.totalorder %s1561_s22, %s1561_s22 }
   0x8   :  { %p1568_p3 = por %p1567_p2, %p1566_p1 }
   0xa   :  { %p1569_p4 = pnand %p1568_p3, %p1562_p0 }
   0xc   :  { %1572 = shalt.err (!%p1569_p4)
}
   0xd   :  { %s1683_s23 = smov 128   ;;  %s1684_s24 = smov 8  }
   0xe   :  { %37 = dma.hbm_to_vmem [thread:$0]  %s1966_s1, 512, %s32_s19, [#allocation6], %s1683_s23, %s1683_s23, %s1684_s24  }
   0xf   :  { %s1581_s27 = scalar_lea.vmem %s56_s21, 256  ;;  %p1586_p6 = scmp.lt.s32.totalorder %s56_s21, %s56_s21 }
  0x10   :  { %p1582_p5 = scmp.ne.s32.totalorder %s56_s21, %s1581_s27  ;;  %p1587_p7 = scmp.lt.s32.totalorder %s1581_s27, %s1581_s27 }
  0x12   :  { %p1588_p8 = por %p1587_p7, %p1586_p6 }
  0x14   :  { %p1589_p9 = pnand %p1588_p8, %p1582_p5 }
  0x16   :  { %1592 = shalt.err (!%p1589_p9)
}
  0x17   :  { %61 = dma.hbm_to_vmem [thread:$0]  %s1968_s3, 256, %s56_s21, [#allocation9], %s1683_s23, %s1683_s23, %s1684_s24  }
  0x18   :  { %s1685_s30 = smov [#allocation2]   ;;  %s1686_s7 = smov [#allocation7]  }
  0x19   :  { %s19_s6 = sshll.u32 %s1685_s30, 4  ;;  %s43_s8 = sshll.u32 %s1686_s7, 4  ;;  %s20_s6 = int_to_ptr.vmem [resolvable:$true] %s19_s6  ;;  %s44_s8 = int_to_ptr.vmem [resolvable:$true] %s43_s8 }
  0x1a   :  { %s1601_s1 = scalar_lea.vmem %s20_s6, 256  ;;  %p1606_p11 = scmp.lt.s32.totalorder %s20_s6, %s20_s6 }
  0x1b   :  { %p1602_p10 = scmp.ne.s32.totalorder %s20_s6, %s1601_s1  ;;  %p1607_p12 = scmp.lt.s32.totalorder %s1601_s1, %s1601_s1 }
  0x1d   :  { %p1608_p13 = por %p1607_p12, %p1606_p11 }
  0x1f   :  { %p1609_p0 = pnand %p1608_p13, %p1602_p10 }
  0x21   :  { %1612 = shalt.err (!%p1609_p0)
}
  0x22   :  { %25 = dma.hbm_to_vmem [thread:$0]  %s1965_s0, 256, %s20_s6, [#allocation3], %s1683_s23, %s1683_s23, %s1684_s24  }
  0x23   :  { %s1621_s3 = scalar_lea.vmem %s44_s8, 512  ;;  %p1626_p2 = scmp.lt.s32.totalorder %s44_s8, %s44_s8 }
  0x24   :  { %p1622_p1 = scmp.ne.s32.totalorder %s44_s8, %s1621_s3  ;;  %p1627_p3 = scmp.lt.s32.totalorder %s1621_s3, %s1621_s3 }
  0x26   :  { %p1628_p4 = por %p1627_p3, %p1626_p2 }
  0x28   :  { %p1629_p5 = pnand %p1628_p4, %p1622_p1 }
  0x2a   :  { %1632 = shalt.err (!%p1629_p5)
}
  0x2b   :  { %49 = dma.hbm_to_vmem [thread:$0]  %s1967_s2, 512, %s44_s8, [#allocation6], %s1683_s23, %s1683_s23, %s1684_s24  }
  0x2c   :  { %s1687_s13 = smov [#allocation10]  }
  0x2d   :  { %s67_s14 = sshll.u32 %s1687_s13, 4  ;;  %s68_s14 = int_to_ptr.vmem [resolvable:$true] %s67_s14 }
  0x2e   :  { %s1641_s15 = scalar_lea.vmem %s68_s14, 256  ;;  %p1646_p7 = scmp.lt.s32.totalorder %s68_s14, %s68_s14 }
  0x2f   :  { %p1642_p6 = scmp.ne.s32.totalorder %s68_s14, %s1641_s15  ;;  %p1647_p8 = scmp.lt.s32.totalorder %s1641_s15, %s1641_s15 }
  0x31   :  { %p1648_p9 = por %p1647_p8, %p1646_p7 }
  0x33   :  { %p1649_p10 = pnand %p1648_p9, %p1642_p6 }
  0x35   :  { %1652 = shalt.err (!%p1649_p10)
}
  0x36   :  { %73 = dma.hbm_to_vmem [thread:$0]  %s1969_s4, 256, %s68_s14, [#allocation9], %s1683_s23, %s1683_s23, %s1684_s24  }
  0x37   :  { %1673 = dma.done.wait [#allocation3], 256  }
  0x38   :  { %1674 = vsyncadd [#allocation3], 4294967040 }
  0x39   :  { %1675 = dma.done.wait [#allocation6], 1024  }
  0x3a   :  { %1676 = vsyncadd [#allocation6], 4294966272 }
  0x3b   :  { %1677 = dma.done.wait [#allocation9], 512  }
  0x3c   :  { %1678 = vsyncadd [#allocation9], 4294966784  ;;  %vm103_vm0 = vcmask 261120   ;;  %v89_v0 = vld [vmem:[#allocation2] sm:$0xff]  ;;  %v90_v1 = vld [vmem:[#allocation2 + $0x8] sm:$0xff]  ;;  %v145_v18 = vlaneseq  ;;  %s1688_s2 = smov 32  }
  0x3d   :  { %v104_v2 = vsel %vm103_vm0, %v89_v0, 0.0  ;;  %v107_v3 = vsel %vm103_vm0, %v90_v1, 0.0  ;;  %v1767_v14 = vld [vmem:[#allocation7 + $0x18] sm:$0xff]  ;;  %v1769_v15 = vld [vmem:[#allocation7 + $0x10] sm:$0xff]  ;;  %v1773_v16 = vld [vmem:[#allocation7 + $0x8] sm:$0xff]  ;;  %vm302_vm5 = vcmask 64512  }
  0x3e   :  { %105 = vadd.xlane.f32.xlu0 %v104_v2  ;;  %1399 = vmatprep.subr.mxu0 %v1767_v14  ;;  %v1779_v17 = vld [vmem:[#allocation7] sm:$0xff]  ;;  %v1783_v19 = vshrl.u32 %v145_v18, 7  ;;  %v92_v52 = vld [vmem:[#allocation5 + $0x8] sm:$0xff]  ;;  %v93_v58 = vld [vmem:[#allocation5 + $0x10] sm:$0xff]  ;;  %s1689_s4 = smov 96   ;;  %s1690_s17 = smov 88  }
  0x3f   :  { %1400 = vmatpush3.msra.mxu0 %v1767_v14  ;;  %v1786_v21 = vld [vmem:[#allocation8] sm:$0xff]  ;;  %v94_v60 = vld [vmem:[#allocation5 + $0x18] sm:$0xff]  ;;  %s1691_s18 = smov 120   ;;  %vm388_vm6 = vcmask 130048   ;;  %s1692_s19 = smov 64   ;;  %vm1128_vm7 = vcmask 195584  }
  0x40   :  { %1401 = vmatprep.subr.mxu0 %v1769_v15  ;;  %v278_v20 = vsub.s32 3, %v1783_v19  ;;  %v147_v39 = vsub.s32 0, %v1783_v19  ;;  %v153_v40 = vsub.s32 1, %v1783_v19  ;;  %v91_v51 = vld [vmem:[#allocation5] sm:$0xff]  ;;  %v272_v53 = vsub.s32 2, %v1783_v19  ;;  %s1693_s20 = smov 56  }
  0x41   :  { %1402 = vmatpush3.msra.mxu0 %v1769_v15  ;;  %s1694_s21 = smov 80   ;;  %s1695_s22 = smov 112  }
  0x42   :  { %108 = vadd.xlane.f32.xlu0 %v107_v3  ;;  %1403 = vmatprep.subr.mxu0 %v1773_v16  ;;  %v279_v22 = vrot.slane %v1786_v21, %v278_v20  ;;  %v148_v41 = vrot.slane %v1786_v21, %v147_v39  ;;  %v154_v44 = vrot.slane %v1786_v21, %v153_v40  ;;  %s1696_s25 = smov 48   ;;  %s1697_s26 = smov 72  }
  0x43   :  { %1404 = vmatpush3.msra.mxu0 %v1773_v16  ;;  %v273_v55 = vrot.slane %v1786_v21, %v272_v53  ;;  %s1698_s27 = smov 104   ;;  %s1699_s28 = smov 40  }
  0x44   :  { %1405 = vmatprep.subr.mxu0 %v1779_v17  ;;  %s1700_s29 = smov 16   ;;  %s1701_s30 = smov 24  }
  0x45   :  { %1406 = vmatpush3.msra.mxu0 %v1779_v17  ;;  %s1702_s6 = smov [#allocation11]  }
  0x46   :  { %s1305_s7 = sshll.u32 %s1702_s6, 4  ;;  %s1306_s7 = int_to_ptr.vmem [resolvable:$true] %s1305_s7 }
  0x47   :  { %s1653_s8 = scalar_lea.vmem %s1306_s7, 256  ;;  %p1658_p12 = scmp.lt.s32.totalorder %s1306_s7, %s1306_s7 }
  0x48   :  { %p1654_p11 = scmp.ne.s32.totalorder %s1306_s7, %s1653_s8  ;;  %p1659_p13 = scmp.lt.s32.totalorder %s1653_s8, %s1653_s8 }
  0x4a   :  { %p1660_p0 = por %p1659_p13, %p1658_p12 }
  0x4c   :  { %p1661_p1 = pnand %p1660_p0, %p1654_p11 }
  0x58   :  { %281 = vrot.lane.b32.xlu0 %v279_v22, %s1688_s2 }
  0xc7   :  { %v106_v4 = vpop.xlane.xlu0 %105 }
  0xc8   :  { %v111_v5 = vmul.f32 0.03125, %v106_v4 }
  0xca   :  { %v113_v6 = vsub.f32 %v89_v0, %v111_v5 }
  0xcb   :  { %v109_v7 = vpop.xlane.xlu0 %108 }
  0xcc   :  { %v112_v8 = vmul.f32 0.03125, %v109_v7  ;;  %v115_v9 = vmul.f32 %v113_v6, %v113_v6 }
  0xce   :  { %v114_v10 = vsub.f32 %v90_v1, %v112_v8  ;;  %v117_v11 = vsel %vm103_vm0, %v115_v9, 0.0  ;;  %v1840_v8 = vld [vmem:[#allocation10 + $0x8] sm:$0xff] }
  0xcf   :  { %118 = vadd.xlane.f32.xlu1 %v117_v11  ;;  %v282_v57 = vpop.permute.xlu0 %281 }
  0xd0   :  { %v116_v12 = vmul.f32 %v114_v10, %v114_v10 }
  0xd2   :  { %v120_v13 = vsel %vm103_vm0, %v116_v12, 0.0 }
  0xd3   :  { %121 = vadd.xlane.f32.xlu1 %v120_v13 }
 0x158   :  { %v119_v23 = vpop.xlane.xlu1 %118 }
 0x159   :  { %v123_v24 = vmul.f32 0.03125, %v119_v23 }
 0x15b   :  { %v125_v25 = vadd.f32 1e-05, %v123_v24 }
 0x15c   :  { %v122_v26 = vpop.xlane.xlu1 %121 }
 0x15d   :  { %1505 = vrsqrt.f32 %v125_v25  ;;  %v124_v27 = vmul.f32 0.03125, %v122_v26  ;;  %vm129_vm1 = vcmp.eq.f32.partialorder %v125_v25, inf  ;;  %v132_v31 = vand.u32 2147483648, %v125_v25 }
 0x15e   :  { %vm131_vm2 = vcmp.eq.f32.partialorder %v125_v25, 0.0 }
 0x15f   :  { %v126_v28 = vadd.f32 1e-05, %v124_v27 }
 0x161   :  { %1507 = vrsqrt.f32 %v126_v28  ;;  %vm136_vm3 = vcmp.eq.f32.partialorder %v126_v28, inf  ;;  %v139_v36 = vand.u32 2147483648, %v126_v28  ;;  %vm138_vm4 = vcmp.eq.f32.partialorder %v126_v28, 0.0 }
 0x16a   :  { %v1506_v29 = vpop.eup %1505 }
 0x16b   :  { %v128_v30 = vmul.f32 %v1506_v29, %v125_v25  ;;  %v288_v29 = vsub.s32 4, %v1783_v19 }
 0x16d   :  { %v130_v32 = vsel %vm129_vm1, %v125_v25, %v128_v30 }
 0x16e   :  { %v133_v33 = vsel %vm131_vm2, %v132_v31, %v130_v32  ;;  %v1508_v34 = vpop.eup %1507  ;;  %v289_v31 = vrot.slane %v1786_v21, %v288_v29 }
 0x16f   :  { %1509 = vrcp.f32 %v133_v33  ;;  %v135_v35 = vmul.f32 %v1508_v34, %v126_v28 }
 0x171   :  { %v137_v37 = vsel %vm136_vm3, %v126_v28, %v135_v35 }
 0x172   :  { %v140_v38 = vsel %vm138_vm4, %v139_v36, %v137_v37 }
 0x173   :  { %1511 = vrcp.f32 %v140_v38 }
 0x17c   :  { %v1510_v42 = vpop.eup %1509 }
 0x17d   :  { %v142_v43 = vmul.f32 %v1510_v42, %v113_v6 }
 0x17f   :  { %v149_v45 = vmul.f32 %v148_v41, %v142_v43 }
 0x180   :  { %v1512_v46 = vpop.eup %1511 }
 0x181   :  { %v1798_v47 = vadd.f32 %v154_v44, %v149_v45  ;;  %v144_v48 = vmul.f32 %v1512_v46, %v114_v10  ;;  %v1842_v10 = vld [vmem:[#allocation10] sm:$0xff] }
 0x183   :  { %1407 = vmatprep.mubr.msk.f32.mxu0 %vm103_vm0, %v1798_v47  ;;  %v150_v49 = vmul.f32 %v148_v41, %v144_v48 }
 0x185   :  { %v1802_v50 = vadd.f32 %v154_v44, %v150_v49 }
 0x187   :  { %1408 = vmatmul.mubr.msk.f32.vlgmr.msra.gmra.mxu0 %vm103_vm0, %v1802_v50 }
 0x188   :  { %1410 = vmatprep.mubr.msk.f32.mxu0 %vm103_vm0, %v91_v51 }
 0x18b   :  { %1411 = vmatmul.mubr.msk.f32.gmra.mxu0 %vm103_vm0, %v92_v52 }
 0x18c   :  { %1413 = vmatprep.mubr.msk.f32.mxu0 %vm103_vm0, %v93_v58 }
 0x18f   :  { %1414 = vmatmul.mubr.msk.f32.gmra.mxu0 %vm103_vm0, %v94_v60 }
 0x247   :  { %v1409_v54 = vpop.f32.mrf.mxu0 }
 0x248   :  { %v1822_v1 = vadd.f32 %v1409_v54, %v273_v55 }
 0x249   :  { %v241_v56 = vpop.f32.mrf.mxu0 }
 0x24a   :  { %v1810_v59 = vadd.f32 %v273_v55, %v241_v56 }
 0x24b   :  { %v1412_v61 = vpop.f32.mrf.mxu0 }
 0x24c   :  { %v1814_v62 = vadd.f32 %v1412_v61, %v282_v57  ;;  %1420 = vmatprep.mubr.msk.f32.mxu1 %vm302_vm5, %v1810_v59 }
 0x24d   :  { %v251_v63 = vpop.f32.mrf.mxu0 }
 0x24e   :  { %v1818_v0 = vadd.f32 %v282_v57, %v251_v63  ;;  %300 = vrot.lane.b32.xlu1 %v1814_v62, %s1689_s4 }
 0x24f   :  { %v1415_v13 = vpop.f32.mrf.mxu0 }
 0x250   :  { %504 = vrot.lane.b32.xlu0 %v1818_v0, %s1690_s17 }
 0x251   :  { %v261_v23 = vpop.f32.mrf.mxu0 }
 0x252   :  { %298 = vrot.lane.b32.xlu1 %v1818_v0, %s1689_s4 }
 0x254   :  { %502 = vrot.lane.b32.xlu0 %v1822_v1, %s1691_s18 }
 0x256   :  { %506 = vrot.lane.b32.xlu1 %v1814_v62, %s1690_s17 }
 0x25a   :  { %500 = vrot.lane.b32.xlu1 %v1810_v59, %s1691_s18 }
 0x2c0   :  { %v301_v2 = vpop.permute.xlu1 %300 }
 0x2c1   :  { %1416 = vmatprep.subr.msk.mxu1 %vm302_vm5, %v301_v2 }
 0x2c2   :  { %1417 = vmatpush3.xpose.msk.msra.mxu1 %vm302_vm5, %v301_v2  ;;  %v505_v5 = vpop.permute.xlu0 %504 }
 0x2c4   :  { %v299_v3 = vpop.permute.xlu1 %298 }
 0x2c5   :  { %1418 = vmatprep.subr.msk.mxu1 %vm302_vm5, %v299_v3 }
 0x2c6   :  { %1419 = vmatpush3.xpose.msk.msra.mxu1 %vm302_vm5, %v299_v3  ;;  %v503_v7 = vpop.permute.xlu0 %502 }
 0x2c8   :  { %v507_v4 = vpop.permute.xlu1 %506 }
 0x2c9   :  { %1421 = vmatmul.mubr.msk.f32.vlgmr.msra.gmra.mxu1 %vm302_vm5, %v1822_v1  ;;  %1430 = vmatprep.subr.msk.mxu0 %vm302_vm5, %v507_v4 }
 0x2ca   :  { %1431 = vmatpush3.xpose.msk.msra.mxu0 %vm302_vm5, %v507_v4 }
 0x2cb   :  { %1432 = vmatprep.subr.msk.mxu0 %vm302_vm5, %v505_v5 }
 0x2cc   :  { %v501_v6 = vpop.permute.xlu1 %500 }
 0x2cd   :  { %1434 = vmatprep.mubr.msk.f32.mxu0 %vm302_vm5, %v501_v6 }
 0x2ce   :  { %1433 = vmatpush3.xpose.msk.msra.mxu0 %vm302_vm5, %v505_v5 }
 0x2d1   :  { %1435 = vmatmul.mubr.msk.f32.vlgmr.msra.gmra.mxu0 %vm302_vm5, %v503_v7 }
 0x389   :  { %v1422_v9 = vpop.f32.mrf.mxu1 }
 0x38a   :  { %v385_v11 = vadd.f32 %v1422_v9, %v1840_v8 }
 0x38b   :  { %v379_v12 = vpop.f32.mrf.mxu1 }
 0x38c   :  { %v380_v18 = vadd.f32 %v379_v12, %v1842_v10  ;;  %v392_v20 = vsel %vm388_vm6, %v385_v11, -inf }
 0x38d   :  { %393 = vmax.xlane.f32.xlu0 %v392_v20 }
 0x38e   :  { %v389_v22 = vsel %vm388_vm6, %v380_v18, -inf }
 0x38f   :  { %390 = vmax.xlane.f32.xlu1 %v389_v22 }
 0x391   :  { %v1436_v24 = vpop.f32.mrf.mxu0 }
 0x392   :  { %v588_v27 = vadd.f32 %v1436_v24, %v1840_v8 }
 0x393   :  { %v582_v25 = vpop.f32.mrf.mxu0 }
 0x394   :  { %v583_v26 = vadd.f32 %v582_v25, %v1842_v10  ;;  %v594_v30 = vsel %vm388_vm6, %v588_v27, -inf }
 0x396   :  { %v591_v28 = vsel %vm388_vm6, %v583_v26, -inf }
 0x397   :  { %592 = vmax.xlane.f32.xlu0 %v591_v28 }
 0x39b   :  { %595 = vmax.xlane.f32.xlu0 %v594_v30 }
 0x3a0   :  { %291 = vrot.lane.b32.xlu1 %v289_v31, %s1692_s19 }
 0x416   :  { %v394_v32 = vpop.xlane.xlu0 %393 }
 0x417   :  { %v396_v33 = vsub.f32 %v385_v11, %v394_v32 }
 0x418   :  { %v391_v34 = vpop.xlane.xlu1 %390 }
 0x419   :  { %v399_v35 = vmul.f32 1.442695, %v396_v33  ;;  %v395_v41 = vsub.f32 %v380_v18, %v391_v34 }
 0x41b   :  { %1513 = vpow2.f32 %v399_v35  ;;  %v397_v45 = vmul.f32 1.442695, %v395_v41 }
 0x41c   :  { %v292_v36 = vpop.permute.xlu1 %291 }
 0x41d   :  { %v1855_v37 = vadd.f32 %v1415_v13, %v292_v36  ;;  %v1860_v43 = vadd.f32 %v292_v36, %v261_v23 }
 0x41f   :  { %415 = vrot.lane.b32.xlu1 %v1855_v37, %s1692_s19 }
 0x420   :  { %v593_v38 = vpop.xlane.xlu0 %592 }
 0x421   :  { %v597_v46 = vsub.f32 %v583_v26, %v593_v38 }
 0x423   :  { %615 = vrot.lane.b32.xlu1 %v1855_v37, %s1693_s20  ;;  %v599_v52 = vmul.f32 1.442695, %v597_v46 }
 0x424   :  { %v596_v42 = vpop.xlane.xlu0 %595 }
 0x425   :  { %v598_v44 = vsub.f32 %v588_v27, %v596_v42 }
 0x427   :  { %v601_v48 = vmul.f32 1.442695, %v598_v44  ;;  %613 = vrot.lane.b32.xlu1 %v1860_v43, %s1693_s20 }
 0x428   :  { %v1514_v49 = vpop.eup %1513 }
 0x429   :  { %1515 = vpow2.f32 %v601_v48  ;;  %v404_v51 = vsel %vm388_vm6, %v1514_v49, 0.0 }
 0x42a   :  { %405 = vadd.xlane.f32.xlu0 %v404_v51  ;;  %1517 = vpow2.f32 %v397_v45 }
 0x42b   :  { %706 = vrot.lane.b32.xlu1 %v1814_v62, %s1694_s21  ;;  %1519 = vpow2.f32 %v599_v52 }
 0x42f   :  { %704 = vrot.lane.b32.xlu1 %v1818_v0, %s1694_s21 }
 0x433   :  { %700 = vrot.lane.b32.xlu1 %v1810_v59, %s1695_s22 }
 0x436   :  { %v1516_v53 = vpop.eup %1515 }
 0x437   :  { %702 = vrot.lane.b32.xlu1 %v1822_v1, %s1695_s22  ;;  %v606_v54 = vsel %vm388_vm6, %v1516_v53, 0.0  ;;  %v1518_v55 = vpop.eup %1517 }
 0x438   :  { %607 = vadd.xlane.f32.xlu0 %v606_v54  ;;  %v401_v56 = vsel %vm388_vm6, %v1518_v55, 0.0  ;;  %v1520_v57 = vpop.eup %1519 }
 0x439   :  { %v603_v58 = vsel %vm388_vm6, %v1520_v57, 0.0 }
 0x43c   :  { %402 = vadd.xlane.f32.xlu0 %v401_v56 }
 0x440   :  { %604 = vadd.xlane.f32.xlu0 %v603_v58 }
 0x456   :  { %413 = vrot.lane.b32.xlu0 %v1860_v43, %s1692_s19 }
 0x491   :  { %v416_v60 = vpop.permute.xlu1 %415 }
 0x492   :  { %1423 = vmatprep.subr.mxu1 %v416_v60 }
 0x493   :  { %1424 = vmatpush3.msra.mxu1 %v416_v60 }
 0x495   :  { %v616_v2 = vpop.permute.xlu1 %615 }
 0x499   :  { %v614_v4 = vpop.permute.xlu1 %613 }
 0x49d   :  { %v707_v7 = vpop.permute.xlu1 %706 }
 0x4a1   :  { %v705_v13 = vpop.permute.xlu1 %704 }
 0x4a5   :  { %v701_v25 = vpop.permute.xlu1 %700 }
 0x4a9   :  { %v703_v26 = vpop.permute.xlu1 %702 }
 0x4b3   :  { %v406_v61 = vpop.xlane.xlu0 %405 }
 0x4b4   :  { %1521 = vrcp.f32 %v406_v61 }
 0x4c1   :  { %v608_v63 = vpop.xlane.xlu0 %607  ;;  %v1522_v9 = vpop.eup %1521 }
 0x4c2   :  { %v410_v18 = vmul.f32 %v1522_v9, %v1514_v49 }
 0x4c5   :  { %v403_v3 = vpop.xlane.xlu0 %402 }
 0x4c6   :  { %1523 = vrcp.f32 %v403_v3 }
 0x4c7   :  { %1525 = vrcp.f32 %v608_v63 }
 0x4c9   :  { %v605_v5 = vpop.xlane.xlu0 %604 }
 0x4ca   :  { %1527 = vrcp.f32 %v605_v5 }
 0x4cd   :  { %v414_v6 = vpop.permute.xlu0 %413 }
 0x4ce   :  { %1425 = vmatprep.subr.mxu1 %v414_v6 }
 0x4cf   :  { %1426 = vmatpush3.msra.mxu1 %v414_v6 }
 0x4d0   :  { %1437 = vmatprep.subr.mxu1 %v616_v2 }
 0x4d3   :  { %v1524_v11 = vpop.eup %1523 }
 0x4d4   :  { %v408_v12 = vmul.f32 %v1524_v11, %v1518_v55  ;;  %v1526_v20 = vpop.eup %1525 }
 0x4d5   :  { %v612_v24 = vmul.f32 %v1526_v20, %v1516_v53 }
 0x4d6   :  { %1427 = vmatprep.mubr.msk.f32.mxu1 %vm388_vm6, %v408_v12 }
 0x4d7   :  { %v1528_v22 = vpop.eup %1527  ;;  %1428 = vmatmul.mubr.msk.f32.vlgmr.msra.gmra.mxu1 %vm388_vm6, %v410_v18 }
 0x4d8   :  { %1438 = vmatpush3.msra.mxu1 %v616_v2  ;;  %v610_v23 = vmul.f32 %v1528_v22, %v1520_v57 }
 0x4d9   :  { %1439 = vmatprep.subr.mxu1 %v614_v4 }
 0x4da   :  { %1440 = vmatpush3.msra.mxu1 %v614_v4  ;;  %1441 = vmatprep.mubr.msk.f32.mxu1 %vm388_vm6, %v610_v23 }
 0x4db   :  { %1444 = vmatprep.subr.msk.mxu1 %vm302_vm5, %v707_v7  ;;  %1442 = vmatmul.mubr.msk.f32.vlgmr.msra.gmra.mxu1 %vm388_vm6, %v612_v24 }
 0x4dc   :  { %1445 = vmatpush3.xpose.msk.msra.mxu1 %vm302_vm5, %v707_v7  ;;  %1448 = vmatprep.mubr.msk.f32.mxu1 %vm302_vm5, %v701_v25 }
 0x4dd   :  { %1446 = vmatprep.subr.msk.mxu1 %vm302_vm5, %v705_v13 }
 0x4e0   :  { %1447 = vmatpush3.xpose.msk.msra.mxu1 %vm302_vm5, %v705_v13 }
 0x4e3   :  { %1449 = vmatmul.mubr.msk.f32.vlgmr.msra.gmra.mxu1 %vm302_vm5, %v703_v26 }
 0x597   :  { %v1883_v27 = vpop.f32.mrf.mxu1 }
 0x599   :  { %v1885_v28 = vpop.f32.mrf.mxu1 }
 0x59b   :  { %v1887_v29 = vpop.f32.mrf.mxu1 }
 0x59d   :  { %v1889_v30 = vpop.f32.mrf.mxu1 }
 0x5a3   :  { %v1450_v31 = vpop.f32.mrf.mxu1 }
 0x5a4   :  { %v788_v32 = vadd.f32 %v1450_v31, %v1840_v8 }
 0x5a5   :  { %v782_v33 = vpop.f32.mrf.mxu1 }
 0x5a6   :  { %v783_v34 = vadd.f32 %v782_v33, %v1842_v10  ;;  %v794_v35 = vsel %vm388_vm6, %v788_v32, -inf }
 0x5a7   :  { %795 = vmax.xlane.f32.xlu1 %v794_v35 }
 0x5a8   :  { %v791_v36 = vsel %vm388_vm6, %v783_v34, -inf }
 0x5a9   :  { %792 = vmax.xlane.f32.xlu0 %v791_v36 }
 0x5b8   :  { %813 = vrot.lane.b32.xlu1 %v1860_v43, %s1696_s25 }
 0x5bc   :  { %906 = vrot.lane.b32.xlu1 %v1814_v62, %s1697_s26 }
 0x5c0   :  { %904 = vrot.lane.b32.xlu1 %v1818_v0, %s1697_s26 }
 0x5c4   :  { %902 = vrot.lane.b32.xlu1 %v1822_v1, %s1698_s27 }
 0x630   :  { %v796_v38 = vpop.xlane.xlu1 %795 }
 0x631   :  { %v798_v41 = vsub.f32 %v788_v32, %v796_v38 }
 0x632   :  { %v793_v42 = vpop.xlane.xlu0 %792 }
 0x633   :  { %v801_v44 = vmul.f32 1.442695, %v798_v41  ;;  %v797_v45 = vsub.f32 %v783_v34, %v793_v42 }
 0x634   :  { %v814_v52 = vpop.permute.xlu1 %813 }
 0x635   :  { %1529 = vpow2.f32 %v801_v44  ;;  %v799_v46 = vmul.f32 1.442695, %v797_v45 }
 0x637   :  { %1531 = vpow2.f32 %v799_v46 }
 0x638   :  { %v907_v54 = vpop.permute.xlu1 %906 }
 0x63c   :  { %v905_v60 = vpop.permute.xlu1 %904 }
 0x640   :  { %v903_v61 = vpop.permute.xlu1 %902 }
 0x642   :  { %v1530_v48 = vpop.eup %1529 }
 0x643   :  { %v806_v49 = vsel %vm388_vm6, %v1530_v48, 0.0 }
 0x644   :  { %v1532_v51 = vpop.eup %1531  ;;  %807 = vadd.xlane.f32.xlu0 %v806_v49 }
 0x645   :  { %v803_v62 = vsel %vm388_vm6, %v1532_v51, 0.0 }
 0x648   :  { %804 = vadd.xlane.f32.xlu0 %v803_v62 }
 0x65e   :  { %815 = vrot.lane.b32.xlu0 %v1855_v37, %s1696_s25 }
 0x662   :  { %900 = vrot.lane.b32.xlu0 %v1810_v59, %s1698_s27 }
 0x6cd   :  { %v808_v0 = vpop.xlane.xlu0 %807 }
 0x6ce   :  { %1533 = vrcp.f32 %v808_v0  ;;  %v1133_v0 = vsub.s32 5, %v1783_v19 }
 0x6d1   :  { %v805_v1 = vpop.xlane.xlu0 %804 }
 0x6d2   :  { %1535 = vrcp.f32 %v805_v1  ;;  %v1134_v1 = vrot.slane %v1786_v21, %v1133_v0 }
 0x6d5   :  { %v816_v53 = vpop.permute.xlu0 %815 }
 0x6d6   :  { %1451 = vmatprep.subr.mxu0 %v816_v53 }
 0x6d7   :  { %1452 = vmatpush3.msra.mxu0 %v816_v53 }
 0x6d8   :  { %1453 = vmatprep.subr.mxu0 %v814_v52 }
 0x6d9   :  { %1454 = vmatpush3.msra.mxu0 %v814_v52  ;;  %v901_v59 = vpop.permute.xlu0 %900  ;;  %v1240_v52 = vsub.s32 7, %v1783_v19 }
 0x6da   :  { %1458 = vmatprep.subr.msk.mxu0 %vm302_vm5, %v907_v54 }
 0x6db   :  { %v1534_v55 = vpop.eup %1533 }
 0x6dc   :  { %v812_v58 = vmul.f32 %v1534_v55, %v1530_v48 }
 0x6df   :  { %v1536_v56 = vpop.eup %1535 }
 0x6e0   :  { %v810_v57 = vmul.f32 %v1536_v56, %v1532_v51 }
 0x6e2   :  { %1455 = vmatprep.mubr.msk.f32.mxu0 %vm388_vm6, %v810_v57 }
 0x6e3   :  { %1456 = vmatmul.mubr.msk.f32.vlgmr.msra.gmra.mxu0 %vm388_vm6, %v812_v58 }
 0x6e4   :  { %1459 = vmatpush3.xpose.msk.msra.mxu0 %vm302_vm5, %v907_v54  ;;  %1462 = vmatprep.mubr.msk.f32.mxu0 %vm302_vm5, %v901_v59 }
 0x6e5   :  { %1460 = vmatprep.subr.msk.mxu0 %vm302_vm5, %v905_v60 }
 0x6e8   :  { %1461 = vmatpush3.xpose.msk.msra.mxu0 %vm302_vm5, %v905_v60 }
 0x6eb   :  { %1463 = vmatmul.mubr.msk.f32.vlgmr.msra.gmra.mxu0 %vm302_vm5, %v903_v61 }
 0x7a3   :  { %v1457_v63 = vpop.f32.mrf.mxu0 }
 0x7a5   :  { %v891_v2 = vpop.f32.mrf.mxu0 }
 0x7ab   :  { %v1464_v3 = vpop.f32.mrf.mxu0 }
 0x7ac   :  { %v988_v4 = vadd.f32 %v1464_v3, %v1840_v8 }
 0x7ad   :  { %v982_v5 = vpop.f32.mrf.mxu0 }
 0x7ae   :  { %v983_v6 = vadd.f32 %v982_v5, %v1842_v10  ;;  %v994_v7 = vsel %vm388_vm6, %v988_v4, -inf }
 0x7af   :  { %995 = vmax.xlane.f32.xlu1 %v994_v7 }
 0x7b0   :  { %v991_v9 = vsel %vm388_vm6, %v983_v6, -inf }
 0x7b1   :  { %992 = vmax.xlane.f32.xlu0 %v991_v9 }
 0x7c0   :  { %1013 = vrot.lane.b32.xlu1 %v1860_v43, %s1699_s28 }
 0x7c4   :  { %1145 = vrot.lane.b32.xlu1 %v1767_v14, %s1688_s2 }
 0x7c8   :  { %1143 = vrot.lane.b32.xlu1 %v1769_v15, %s1688_s2 }
 0x7cc   :  { %1141 = vrot.lane.b32.xlu1 %v1773_v16, %s1688_s2 }
 0x7d0   :  { %1110 = vrot.lane.b32.xlu1 %v891_v2, %s1700_s29 }
 0x838   :  { %v996_v8 = vpop.xlane.xlu1 %995 }
 0x839   :  { %v998_v10 = vsub.f32 %v988_v4, %v996_v8 }
 0x83a   :  { %v993_v11 = vpop.xlane.xlu0 %992 }
 0x83b   :  { %v1001_v12 = vmul.f32 1.442695, %v998_v10  ;;  %v997_v13 = vsub.f32 %v983_v6, %v993_v11 }
 0x83c   :  { %v1014_v23 = vpop.permute.xlu1 %1013 }
 0x83d   :  { %1537 = vpow2.f32 %v1001_v12  ;;  %v999_v18 = vmul.f32 1.442695, %v997_v13 }
 0x83f   :  { %1539 = vpow2.f32 %v999_v18 }
 0x84a   :  { %v1538_v43 = vpop.eup %1537 }
 0x84b   :  { %v1006_v20 = vsel %vm388_vm6, %v1538_v43, 0.0 }
 0x84c   :  { %v1540_v14 = vpop.eup %1539  ;;  %1007 = vadd.xlane.f32.xlu0 %v1006_v20 }
 0x84d   :  { %v1003_v15 = vsel %vm388_vm6, %v1540_v14, 0.0 }
 0x850   :  { %1004 = vadd.xlane.f32.xlu0 %v1003_v15 }
 0x866   :  { %1015 = vrot.lane.b32.xlu0 %v1855_v37, %s1699_s28  ;;  %v1146_v37 = vpop.permute.xlu1 %1145 }
 0x86a   :  { %1102 = vrot.lane.b32.xlu0 %v1889_v30, %s1684_s24  ;;  %v1144_v30 = vpop.permute.xlu1 %1143 }
 0x86e   :  { %1104 = vrot.lane.b32.xlu0 %v1887_v29, %s1684_s24 }
 0x872   :  { %1112 = vrot.lane.b32.xlu0 %v1457_v63, %s1700_s29 }
 0x876   :  { %1139 = vrot.lane.b32.xlu0 %v1779_v17, %s1688_s2  ;;  %v1142_v17 = vpop.permute.xlu1 %1141 }
 0x87a   :  { %v1111_v41 = vpop.permute.xlu1 %1110 }
 0x8d5   :  { %v1008_v16 = vpop.xlane.xlu0 %1007 }
 0x8d6   :  { %1541 = vrcp.f32 %v1008_v16 }
 0x8d9   :  { %v1005_v22 = vpop.xlane.xlu0 %1004 }
 0x8da   :  { %1543 = vrcp.f32 %v1005_v22 }
 0x8dd   :  { %v1016_v24 = vpop.permute.xlu0 %1015 }
 0x8de   :  { %1465 = vmatprep.subr.mxu1 %v1016_v24 }
 0x8df   :  { %1466 = vmatpush3.msra.mxu1 %v1016_v24 }
 0x8e0   :  { %1467 = vmatprep.subr.mxu1 %v1014_v23 }
 0x8e1   :  { %1468 = vmatpush3.msra.mxu1 %v1014_v23  ;;  %v1103_v32 = vpop.permute.xlu0 %1102 }
 0x8e2   :  { %1472 = vmatprep.subr.mxu1 %v1146_v37  ;;  %v1124_v42 = vsel %vm302_vm5, %v1885_v28, %v1103_v32  ;;  %v1234_v28 = vsub.s32 6, %v1783_v19 }
 0x8e3   :  { %v1542_v25 = vpop.eup %1541  ;;  %v1126_v45 = vsel %vm388_vm6, %v1124_v42, %v1111_v41 }
 0x8e4   :  { %v1012_v31 = vmul.f32 %v1542_v25, %v1538_v43  ;;  %v1235_v53 = vrot.slane %v1786_v21, %v1234_v28 }
 0x8e5   :  { %v1105_v33 = vpop.permute.xlu0 %1104 }
 0x8e6   :  { %v1125_v48 = vsel %vm302_vm5, %v1883_v27, %v1105_v33  ;;  %v1241_v27 = vrot.slane %v1786_v21, %v1240_v52 }
 0x8e7   :  { %v1544_v26 = vpop.eup %1543 }
 0x8e8   :  { %v1010_v29 = vmul.f32 %v1544_v26, %v1540_v14 }
 0x8e9   :  { %v1113_v34 = vpop.permute.xlu0 %1112 }
 0x8ea   :  { %1469 = vmatprep.mubr.msk.f32.mxu1 %vm388_vm6, %v1010_v29  ;;  %v1127_v49 = vsel %vm388_vm6, %v1125_v48, %v1113_v34 }
 0x8eb   :  { %1470 = vmatmul.mubr.msk.f32.vlgmr.msra.gmra.mxu1 %vm388_vm6, %v1012_v31  ;;  %v100_v31 = vld [vmem:[#allocation8 + $0x8] sm:$0xff] }
 0x8ec   :  { %1473 = vmatpush3.msra.mxu1 %v1146_v37  ;;  %v1295_v33 = vrot.slane %v100_v31, %v153_v40 }
 0x8ed   :  { %1474 = vmatprep.subr.mxu1 %v1144_v30  ;;  %v1140_v35 = vpop.permute.xlu0 %1139 }
 0x8ee   :  { %1475 = vmatpush3.msra.mxu1 %v1144_v30 }
 0x8ef   :  { %1476 = vmatprep.subr.mxu1 %v1142_v17 }
 0x8f0   :  { %1477 = vmatpush3.msra.mxu1 %v1142_v17  ;;  %v1289_v17 = vrot.slane %v100_v31, %v147_v39 }
 0x8f1   :  { %1478 = vmatprep.subr.mxu1 %v1140_v35 }
 0x8f2   :  { %1479 = vmatpush3.msra.mxu1 %v1140_v35 }
 0x9ab   :  { %v1471_v36 = vpop.f32.mrf.mxu1 }
 0x9ad   :  { %v1091_v38 = vpop.f32.mrf.mxu1 }
 0x9ae   :  { %1118 = vrot.lane.b32.xlu1 %v1091_v38, %s1701_s30 }
 0x9b2   :  { %1120 = vrot.lane.b32.xlu1 %v1471_v36, %s1701_s30 }
 0xa20   :  { %v1119_v44 = vpop.permute.xlu1 %1118 }
 0xa21   :  { %v1129_v46 = vsel %vm1128_vm7, %v1126_v45, %v1119_v44 }
 0xa22   :  { %1480 = vmatprep.mubr.msk.f32.mxu1 %vm103_vm0, %v1129_v46 }
 0xa24   :  { %v1121_v51 = vpop.permute.xlu1 %1120 }
 0xa25   :  { %v1130_v62 = vsel %vm1128_vm7, %v1127_v49, %v1121_v51 }
 0xa26   :  { %1481 = vmatmul.mubr.msk.f32.vlgmr.msra.gmra.mxu1 %vm103_vm0, %v1130_v62 }
 0xae6   :  { %v1482_v54 = vpop.f32.mrf.mxu1 }
 0xae7   :  { %v1229_v55 = vadd.f32 %v1482_v54, %v1134_v1 }
 0xae8   :  { %v1223_v56 = vpop.f32.mrf.mxu1 }
 0xae9   :  { %v1237_v57 = vmul.f32 %v1235_v53, %v1229_v55  ;;  %v1224_v58 = vadd.f32 %v1223_v56, %v1134_v1 }
 0xaeb   :  { %v1236_v59 = vmul.f32 %v1235_v53, %v1224_v58  ;;  %v1243_v60 = vadd.f32 %v1241_v27, %v1237_v57 }
 0xaed   :  { %v1245_v61 = vadd.f32 %v1243_v60, %v1802_v50  ;;  %v1242_v63 = vadd.f32 %v1241_v27, %v1236_v59 }
 0xaef   :  { %v1249_v2 = vsel %vm103_vm0, %v1245_v61, 0.0  ;;  %v1244_v3 = vadd.f32 %v1242_v63, %v1798_v47 }
 0xaf0   :  { %1250 = vadd.xlane.f32.xlu1 %v1249_v2 }
 0xaf1   :  { %v1246_v4 = vsel %vm103_vm0, %v1244_v3, 0.0 }
 0xaf2   :  { %1247 = vadd.xlane.f32.xlu0 %v1246_v4 }
 0xb79   :  { %v1251_v5 = vpop.xlane.xlu1 %1250 }
 0xb7a   :  { %v1253_v6 = vmul.f32 0.03125, %v1251_v5 }
 0xb7b   :  { %v1248_v7 = vpop.xlane.xlu0 %1247 }
 0xb7c   :  { %v1252_v21 = vmul.f32 0.03125, %v1248_v7  ;;  %v1255_v9 = vsub.f32 %v1245_v61, %v1253_v6 }
 0xb7e   :  { %v1254_v8 = vsub.f32 %v1244_v3, %v1252_v21  ;;  %v1257_v12 = vmul.f32 %v1255_v9, %v1255_v9 }
 0xb80   :  { %v1256_v10 = vmul.f32 %v1254_v8, %v1254_v8  ;;  %v1261_v50 = vsel %vm103_vm0, %v1257_v12, 0.0 }
 0xb82   :  { %v1258_v11 = vsel %vm103_vm0, %v1256_v10, 0.0 }
 0xb83   :  { %1259 = vadd.xlane.f32.xlu0 %v1258_v11 }
 0xb87   :  { %1262 = vadd.xlane.f32.xlu0 %v1261_v50 }
 0xc0c   :  { %v1260_v13 = vpop.xlane.xlu0 %1259 }
 0xc0d   :  { %v1264_v47 = vmul.f32 0.03125, %v1260_v13 }
 0xc0f   :  { %v1266_v18 = vadd.f32 1e-05, %v1264_v47 }
 0xc10   :  { %v1263_v43 = vpop.xlane.xlu0 %1262 }
 0xc11   :  { %1545 = vrsqrt.f32 %v1266_v18  ;;  %v1265_v20 = vmul.f32 0.03125, %v1263_v43  ;;  %vm1270_vm8 = vcmp.eq.f32.partialorder %v1266_v18, inf  ;;  %v1273_v22 = vand.u32 2147483648, %v1266_v18 }
 0xc12   :  { %vm1272_vm9 = vcmp.eq.f32.partialorder %v1266_v18, 0.0 }
 0xc13   :  { %v1267_v14 = vadd.f32 1e-05, %v1265_v20 }
 0xc15   :  { %1547 = vrsqrt.f32 %v1267_v14  ;;  %vm1277_vm10 = vcmp.eq.f32.partialorder %v1267_v14, inf  ;;  %v1280_v26 = vand.u32 2147483648, %v1267_v14  ;;  %vm1279_vm11 = vcmp.eq.f32.partialorder %v1267_v14, 0.0 }
 0xc1e   :  { %v1546_v15 = vpop.eup %1545 }
 0xc1f   :  { %v1269_v16 = vmul.f32 %v1546_v15, %v1266_v18 }
 0xc21   :  { %v1271_v23 = vsel %vm1270_vm8, %v1266_v18, %v1269_v16 }
 0xc22   :  { %v1274_v24 = vsel %vm1272_vm9, %v1273_v22, %v1271_v23  ;;  %v1548_v37 = vpop.eup %1547 }
 0xc23   :  { %1549 = vrcp.f32 %v1274_v24  ;;  %v1276_v25 = vmul.f32 %v1548_v37, %v1267_v14 }
 0xc25   :  { %v1278_v30 = vsel %vm1277_vm10, %v1267_v14, %v1276_v25 }
 0xc26   :  { %v1281_v29 = vsel %vm1279_vm11, %v1280_v26, %v1278_v30 }
 0xc27   :  { %1551 = vrcp.f32 %v1281_v29 }
 0xc30   :  { %v1550_v32 = vpop.eup %1549 }
 0xc31   :  { %v1283_v34 = vmul.f32 %v1550_v32, %v1254_v8 }
 0xc33   :  { %v1290_v35 = vmul.f32 %v1289_v17, %v1283_v34 }
 0xc34   :  { %v1552_v36 = vpop.eup %1551 }
 0xc35   :  { %v1296_v38 = vadd.f32 %v1295_v33, %v1290_v35  ;;  %v1285_v41 = vmul.f32 %v1552_v36, %v1255_v9 }
 0xc37   :  { %1298 = vst.msk [vmem:[#allocation11] sm:$0xff] %vm103_vm0, %v1296_v38  ;;  %v1291_v42 = vmul.f32 %v1289_v17, %v1285_v41 }
 0xc39   :  { %v1297_v44 = vadd.f32 %v1295_v33, %v1291_v42 }
 0xc3b   :  { %1299 = vst.msk [vmem:[#allocation11 + $0x8] sm:$0xff] %vm103_vm0, %v1297_v44 }
 0xc3c   :  { %1664 = shalt.err (!%p1661_p1)
}
 0xc3d   :  { %1311 = dma.vmem_to_hbm [thread:$0]  %s1306_s7, 256, %s1970_s5, [#allocation4], %s1683_s23, %s1683_s23, %s1684_s24  }
 0xc3e   :  { %1679 = dma.done.wait [#allocation4], 256  }
 0xc3f   :  { %1680 = vsyncadd [#allocation4], 4294967040 }
 0xc40   :  { %1315 = vsyncpa [#allocation3], 1 }
 0xc41   :  { %1316 = vsyncpa [#allocation6], 1 }
 0xc42   :  { %1317 = vsyncpa [#allocation9], 1 }
 0xc43   :  { %1318 = vsyncpa [#allocation4], 1 }

</bundles_post_ra>
